<compile_context>
chip_gen: v6e
topology: v6e:2x2x1
jax: 0.10.0
libtpu: 0.0.40
codegen_flags: <defaults>
</compile_context>

<pallas_src>
import functools

import jax
import jax.numpy as jnp
from jax.experimental import pallas as pl
from jax.experimental.pallas import tpu as pltpu

FRAME = 16                      # samples per SSL "frame" for the stand-in
LANE = 128                      # TPU lane width
FRAMES_PER_ROW = LANE // FRAME  # 8 frames packed into one 128-sample row


def _mos_kernel(x_ref, w_ref, bs_ref, wo_ref, bo_ref, out_ref, acc_ref, *, inv_s):
    """One (batch-tile, time-tile) grid step.

    x_ref  : [TB, TR, 128] f32   waveform rows (8 frames per 128-sample row)
    w_ref  : [128, D]      bf16  w_ssl tiled 8x along K (resident)
    bs_ref : [1, D]        f32   SSL bias, applied post-mean (resident)
    wo_ref : [1, D]        f32   output_layer weight, row form (resident)
    bo_ref : [1]           f32   output_layer bias (SMEM scalar)
    out_ref: [TB, 1]       f32   MOS scores for this batch tile
    acc_ref: [TB, D]       f32   running per-batch feature sums (resident)
    """
    t = pl.program_id(1)

    @pl.when(t == 0)
    def _init():
        acc_ref[...] = jnp.zeros_like(acc_ref)

    # f32 VPU pre-sum over the TR rows of this tile -> [TB, 128].  Every row
    # multiplies the same tiled weight, so summing rows first is exact, keeps
    # the accumulator at [TB, D], and leaves one tiny MXU dot per grid step.
    row_sum = jnp.sum(x_ref[...], axis=1)                          # [TB, 128] f32
    acc_ref[...] += jnp.dot(row_sum.astype(jnp.bfloat16), w_ref[...],
                            preferred_element_type=jnp.float32)    # [TB, D]

    @pl.when(t == pl.num_programs(1) - 1)
    def _finalize():
        # Mean over all S frames, SSL bias, then Linear(D, 1) on the VPU
        # (broadcast multiply + lane reduce instead of an N=1 MXU pass).
        x_mean = acc_ref[...] * inv_s + bs_ref[...]                # [TB, D]
        y = jnp.sum(x_mean * wo_ref[...], axis=-1, keepdims=True)  # [TB, 1]
        out_ref[...] = (y + bo_ref[0]).astype(out_ref.dtype)


def _vmem_capacity_bytes():
    """Physical VMEM per TensorCore (generation-aware); conservative fallback."""
    try:
        cap = getattr(pltpu.get_tpu_info(), "vmem_capacity_bytes", None)
        if cap:
            return int(cap)
    except Exception:
        pass
    return 64 * 1024 * 1024      # v7x-sized fallback (smallest current part)


def _pick_rows_per_tile(n_rows, row_bytes, budget_bytes):
    """Largest TR dividing n_rows, multiple of 8 (or == n_rows), whose
    double-buffered input tile fits `budget_bytes`."""
    if n_rows <= 8 or n_rows % 8 != 0:
        return n_rows
    best = 8
    for cand in range(8, n_rows + 1, 8):
        if n_rows % cand == 0 and 2 * cand * row_bytes <= budget_bytes:
            best = cand
    return best


def mos_predictor_forward(wav, params, *, batch_tile=None, rows_per_tile=None):
    """wav: [B, 1, T] float32.  Returns [B] float32 (matches x.squeeze(1))."""
    w_ssl, b_ssl, w_out, b_out = params
    B, C, T = wav.shape
    D = w_ssl.shape[1]
    assert C == 1 and T % LANE == 0
    # TODO(synk): variable-length audio must be padded to a multiple of 128
    #             samples; padded frames would bias the mean unless masked.
    R = T // LANE                    # 128-sample rows per batch element
    S = T // FRAME                   # SSL frames that torch.mean reduces over

    # --- batch tile: guarantee >=2 batch tiles when possible so the
    #     "parallel" batch axis can split across v7x's two TensorCores -------
    if batch_tile is not None:
        TB = batch_tile
    elif B == 1:
        TB = 1   # TODO(synk): B==1 could instead split the time axis into two
        #          parallel chunks and combine partial sums in the wrapper.
    else:
        TB = max(d for d in range(1, min(8, B // 2) + 1) if B % d == 0)
    assert B % TB == 0

    # --- generation-aware VMEM / time-tile sizing ----------------------------
    vmem_cap = _vmem_capacity_bytes()                  # 64 MiB v7x, 128 MiB v5e/v6e
    vmem_limit = min((vmem_cap * 3) // 4, 100 * 1024 * 1024)
    input_budget = vmem_limit - 2 * 1024 * 1024        # weights/acc/out headroom
    if rows_per_tile is None:
        TR = _pick_rows_per_tile(R, TB * LANE * 4, input_budget)
    else:
        TR = rows_per_tile
    assert R % TR == 0 and (TR % 8 == 0 or TR == R)

    # --- input / weight prep (layout plumbing only; no waveform copies) ------
    # Waveform stays f32: the reshape is free, and the in-kernel bf16 cast
    # happens after the f32 row pre-sum, so HBM sees the data exactly once.
    x_rows = wav.reshape(B, R, LANE)
    # w_ssl [16, D] tiled 8x along K -> [128, D]: one dot per 128-sample row
    # both projects and sums its 8 frames (mean over frames is linear).
    w_tiled = jnp.tile(w_ssl, (FRAMES_PER_ROW, 1)).astype(jnp.bfloat16)
    b_ssl_row = b_ssl.reshape(1, D).astype(jnp.float32)
    w_out_row = w_out.reshape(1, D).astype(jnp.float32)   # [D, 1] -> row form
    b_out_s = b_out.reshape(1).astype(jnp.float32)
    # TODO(synk): at a realistic SSL dim (e.g. 768) pad D to a multiple of 128
    #             for lane-dense accumulator / result stores (trivial at D=32).

    grid = (B // TB, R // TR)
    kernel = functools.partial(_mos_kernel, inv_s=1.0 / S)

    out = pl.pallas_call(
        kernel,
        out_shape=jax.ShapeDtypeStruct((B, 1), jnp.float32),
        grid=grid,
        in_specs=[
            pl.BlockSpec((TB, TR, LANE), lambda b, t: (b, t, 0)),   # waveform
            pl.BlockSpec((LANE, D), lambda b, t: (0, 0)),           # resident W
            pl.BlockSpec((1, D), lambda b, t: (0, 0)),              # resident bias
            pl.BlockSpec((1, D), lambda b, t: (0, 0)),              # resident w_out
            pl.BlockSpec(memory_space=pltpu.MemorySpace.SMEM),      # scalar b_out
        ],
        out_specs=pl.BlockSpec((TB, 1), lambda b, t: (b, 0)),
        scratch_shapes=[pltpu.VMEM((TB, D), jnp.float32)],
        compiler_params=pltpu.CompilerParams(
            dimension_semantics=("parallel", "arbitrary"),
            vmem_limit_bytes=vmem_limit,
        ),
    )(x_rows, w_tiled, b_ssl_row, w_out_row, b_out_s)

    return out[:, 0]   # .squeeze(1)


def init_params(key, ssl_out_dim):
    """Deterministic synthetic parameters (shapes implied by the module)."""
    k1, k2, k3, k4 = jax.random.split(key, 4)
    w_ssl = jax.random.normal(k1, (FRAME, ssl_out_dim), jnp.float32) * 0.1
    b_ssl = jax.random.normal(k2, (1, ssl_out_dim), jnp.float32) * 0.01
    # nn.Linear(ssl_features, 1): torch weight [1, D]; stored here as [D, 1].
    w_out = jax.random.normal(k3, (ssl_out_dim, 1), jnp.float32) * 0.1
    b_out = jax.random.normal(k4, (1, 1), jnp.float32) * 0.01
    return w_ssl, b_ssl, w_out, b_out


if __name__ == "__main__":
    key = jax.random.PRNGKey(0)
    k_wav, k_par = jax.random.split(key)

    B, T, D = 16, 2048, 32          # batch, waveform samples, ssl_out_dim
    wav = jax.random.normal(k_wav, (B, 1, T), jnp.float32)
    params = init_params(k_par, D)

    # Pure-JAX f32 reference with the same stand-in SSL model: per-frame
    # linear projection -> mean over frames -> Linear(D, 1).
    w_ssl, b_ssl, w_out, b_out = params
    frames = wav.reshape(B, T // FRAME, FRAME)
    x_feat = jnp.einsum("bsf,fd->bsd", frames, w_ssl) + b_ssl[None, :, :]
    y_ref = (jnp.mean(x_feat, axis=1) @ w_out + b_out)[:, 0]

    # (a) explicit small tiles -> grid (2, 2): exercises both the
    #     megacore-parallel batch axis and the accumulating time axis.
    out_a = mos_predictor_forward(wav, params, batch_tile=8, rows_per_tile=8)
    out_a = jax.block_until_ready(out_a)
    assert out_a.shape == (B,)
    assert jnp.allclose(out_a, y_ref, atol=5e-3, rtol=5e-3), (out_a, y_ref)

    # (b) auto tiling: exercises the generation-aware VMEM / tile sizing path.
    out_b = mos_predictor_forward(wav, params)
    out_b = jax.block_until_ready(out_b)
    assert out_b.shape == (B,)
    assert jnp.allclose(out_b, y_ref, atol=5e-3, rtol=5e-3), (out_b, y_ref)

    print("KERNEL_OK")
</pallas_src>

<mosaic_0001>
module attributes {stable_mosaic.version = 11 : i64} {
  func.func @_mos_kernel(%arg0: i32, %arg1: i32, %arg2: memref<8x8x128xf32, #tpu.memory_space<vmem>>, %arg3: memref<128x32xbf16, #tpu.memory_space<vmem>>, %arg4: memref<1x32xf32, #tpu.memory_space<vmem>>, %arg5: memref<1x32xf32, #tpu.memory_space<vmem>>, %arg6: memref<1xf32, #tpu.memory_space<smem>>, %arg7: memref<8x1xf32, #tpu.memory_space<vmem>>, %arg8: memref<8x32xf32, #tpu.memory_space<vmem>>) attributes {dimension_semantics = [#tpu.dimension_semantics<parallel>, #tpu.dimension_semantics<arbitrary>], iteration_bounds = array<i64: 2, 2>, scalar_prefetch = 0 : i64, scratch_operands = 1 : i64, tpu.core_type = #tpu.core_type<tc>, window_params = [{transform_indices = @transform_0, window_bounds = array<i64: 8, 8, 128>}, {pipeline_mode = #tpu.pipeline_mode<synchronous>, transform_indices = @transform_1, window_bounds = array<i64: 128, 32>}, {pipeline_mode = #tpu.pipeline_mode<synchronous>, transform_indices = @transform_2, window_bounds = array<i64: 1, 32>}, {pipeline_mode = #tpu.pipeline_mode<synchronous>, transform_indices = @transform_3, window_bounds = array<i64: 1, 32>}, {transform_indices = @transform_4, window_bounds = array<i64: 1>}, {transform_indices = @transform_5, window_bounds = array<i64: 8, 1>}]} {
    %c0_i32 = arith.constant 0 : i32
    %0 = arith.cmpi eq, %arg1, %c0_i32 : i32
    %1 = arith.extui %0 : i1 to i32
    %c0_i32_0 = arith.constant 0 : i32
    %2 = arith.cmpi ne, %1, %c0_i32_0 : i32
    scf.if %2 {
      %cst_11 = arith.constant 0.000000e+00 : f32
      %14 = vector.broadcast %cst_11 : f32 to vector<8x32xf32>
      %c0_12 = arith.constant 0 : index
      %c0_13 = arith.constant 0 : index
      %15 = vector.load %arg8[%c0_12, %c0_13] : memref<8x32xf32, #tpu.memory_space<vmem>>, vector<8x32xf32>
      tpu.vector_store %arg8[%c0_12, %c0_13], %14 {strides = array<i32>} : memref<8x32xf32, #tpu.memory_space<vmem>>, vector<8x32xf32>,
    } else {
    }
    %c0 = arith.constant 0 : index
    %c0_1 = arith.constant 0 : index
    %c0_2 = arith.constant 0 : index
    %3 = vector.load %arg2[%c0, %c0_1, %c0_2] : memref<8x8x128xf32, #tpu.memory_space<vmem>>, vector<8x8x128xf32>
    %cst = arith.constant dense<0.000000e+00> : vector<8x128xf32>
    %4 = vector.multi_reduction <add>, %3, %cst [1] : vector<8x8x128xf32> to vector<8x128xf32>
    %c0_3 = arith.constant 0 : index
    %c0_4 = arith.constant 0 : index
    %5 = vector.load %arg8[%c0_3, %c0_4] : memref<8x32xf32, #tpu.memory_space<vmem>>, vector<8x32xf32>
    %6 = arith.truncf %4 : vector<8x128xf32> to vector<8x128xbf16>
    %c0_5 = arith.constant 0 : index
    %c0_6 = arith.constant 0 : index
    %7 = vector.load %arg3[%c0_5, %c0_6] : memref<128x32xbf16, #tpu.memory_space<vmem>>, vector<128x32xbf16>
    %cst_7 = arith.constant dense<0.000000e+00> : vector<8x32xf32>
    %8 = tpu.matmul %6, %7, %cst_7 {dimension_numbers = #tpu.dot_dimension_numbers<[1], [0], [0], [1], [0, 0, 1, 1], [], []>} : vector<8x128xbf16>, vector<128x32xbf16>, vector<8x32xf32> -> vector<8x32xf32>
    %9 = arith.addf %5, %8 : vector<8x32xf32>
    %c0_8 = arith.constant 0 : index
    %c0_9 = arith.constant 0 : index
    %10 = vector.load %arg8[%c0_8, %c0_9] : memref<8x32xf32, #tpu.memory_space<vmem>>, vector<8x32xf32>
    tpu.vector_store %arg8[%c0_8, %c0_9], %9 {strides = array<i32>} : memref<8x32xf32, #tpu.memory_space<vmem>>, vector<8x32xf32>,
    %c1_i32 = arith.constant 1 : i32
    %11 = arith.cmpi eq, %arg1, %c1_i32 : i32
    %12 = arith.extui %11 : i1 to i32
    %c0_i32_10 = arith.constant 0 : i32
    %13 = arith.cmpi ne, %12, %c0_i32_10 : i32
    scf.if %13 {
      %c0_11 = arith.constant 0 : index
      %c0_12 = arith.constant 0 : index
      %14 = vector.load %arg8[%c0_11, %c0_12] : memref<8x32xf32, #tpu.memory_space<vmem>>, vector<8x32xf32>
      %cst_13 = arith.constant 7.812500e-03 : f32
      %15 = vector.broadcast %cst_13 : f32 to vector<8x32xf32>
      %16 = arith.mulf %14, %15 : vector<8x32xf32>
      %c0_14 = arith.constant 0 : index
      %c0_15 = arith.constant 0 : index
      %17 = vector.load %arg4[%c0_14, %c0_15] : memref<1x32xf32, #tpu.memory_space<vmem>>, vector<1x32xf32>
      %18 = vector.broadcast %17 : vector<1x32xf32> to vector<8x32xf32>
      %19 = arith.addf %16, %18 : vector<8x32xf32>
      %c0_16 = arith.constant 0 : index
      %c0_17 = arith.constant 0 : index
      %20 = vector.load %arg5[%c0_16, %c0_17] : memref<1x32xf32, #tpu.memory_space<vmem>>, vector<1x32xf32>
      %21 = vector.broadcast %20 : vector<1x32xf32> to vector<8x32xf32>
      %22 = arith.mulf %19, %21 : vector<8x32xf32>
      %cst_18 = arith.constant dense<0.000000e+00> : vector<8xf32>
      %23 = vector.multi_reduction <add>, %22, %cst_18 [1] : vector<8x32xf32> to vector<8xf32>
      %24 = vector.shape_cast %23 : vector<8xf32> to vector<8x1xf32>
      %c0_19 = arith.constant 0 : index
      %25 = memref.load %arg6[%c0_19] : memref<1xf32, #tpu.memory_space<smem>>
      %26 = vector.broadcast %25 : f32 to vector<8x1xf32>
      %27 = arith.addf %24, %26 : vector<8x1xf32>
      %c0_20 = arith.constant 0 : index
      %c0_21 = arith.constant 0 : index
      %28 = vector.load %arg7[%c0_20, %c0_21] : memref<8x1xf32, #tpu.memory_space<vmem>>, vector<8x1xf32>
      tpu.vector_store %arg7[%c0_20, %c0_21], %27 {strides = array<i32>} : memref<8x1xf32, #tpu.memory_space<vmem>>, vector<8x1xf32>,
    } else {
    }
    return
  }
  func.func @transform_0(%arg0: i32, %arg1: i32) -> (i32, i32, i32) {
    %c0_i32 = arith.constant 0 : i32
    %c0_i32_0 = arith.constant 0 : i32
    return %arg0, %arg1, %c0_i32 : i32, i32, i32
  }
  func.func @transform_1(%arg0: i32, %arg1: i32) -> (i32, i32) {
    %c0_i32 = arith.constant 0 : i32
    %c0_i32_0 = arith.constant 0 : i32
    %c0_i32_1 = arith.constant 0 : i32
    return %c0_i32, %c0_i32_0 : i32, i32
  }
  func.func @transform_2(%arg0: i32, %arg1: i32) -> (i32, i32) {
    %c0_i32 = arith.constant 0 : i32
    %c0_i32_0 = arith.constant 0 : i32
    %c0_i32_1 = arith.constant 0 : i32
    return %c0_i32, %c0_i32_0 : i32, i32
  }
  func.func @transform_3(%arg0: i32, %arg1: i32) -> (i32, i32) {
    %c0_i32 = arith.constant 0 : i32
    %c0_i32_0 = arith.constant 0 : i32
    %c0_i32_1 = arith.constant 0 : i32
    return %c0_i32, %c0_i32_0 : i32, i32
  }
  func.func @transform_4(%arg0: i32, %arg1: i32) -> i32 {
    %c0_i32 = arith.constant 0 : i32
    %c0_i32_0 = arith.constant 0 : i32
    return %c0_i32 : i32
  }
  func.func @transform_5(%arg0: i32, %arg1: i32) -> (i32, i32) {
    %c0_i32 = arith.constant 0 : i32
    %c0_i32_0 = arith.constant 0 : i32
    return %arg0, %c0_i32 : i32, i32
  }
}

</mosaic_0001>

<bundles_post_ra>
// kernel: tpu_custom_call.1
= control target key start
LH: loop header
LB: loop body
LE: loop exit
PB: predicated region body
PF: predicated region fallthrough
CT: control target
= control target key end

     0   :  { %s1035_s0 = inlined_call_operand.hbm [shape: f32[16,16,128], index: 0, kind: input, shape index: {}]   ;;  %s1036_s1 = inlined_call_operand.vmem [shape: bf16[128,32], index: 1, kind: input, shape index: {}]   ;;  %s1037_s2 = inlined_call_operand.vmem [shape: f32[1,32], index: 2, kind: input, shape index: {}]   ;;  %s1038_s3 = inlined_call_operand.vmem [shape: f32[1,32], index: 3, kind: input, shape index: {}]   ;;  %s1039_s4 = inlined_call_operand.<no memory space> [shape: f32[1], index: 4, kind: input, shape index: {}]   ;;  %s1040_s5 = inlined_call_operand.vmem [shape: f32[16,1], index: 5, kind: output, shape index: {}]  }
   0x1   :  { %10 = sst [smem:[#allocation3]] %s1039_s4 }
   0x2   :  { %11 = vsyncpa [#allocation5], 0 }
   0x3   :  { %13 = vsyncpa [#allocation5 + $0x1], 0  ;;  %s856_s20 = smov 0   ;;  %s858_s21 = smov 0  }
   0x4   :  { %s860_s22 = smov 0   ;;  %s862_s23 = smov 0  }
   0x5   :  { %s864_s24 = smov 0   ;;  %s866_s25 = smov 0  }
   0x6   :  { %s868_s26 = smov 0   ;;  %s870_s27 = smov 0  }
   0x7 LB: > { %s580_s4 = sadd.s32 4294967295, %s814_s27   ;;  %s28_s28 = sadd.s32 1, %s806_s25  ;;  %s814_s27 = sphi %s870_s27, %s19_s27   ;;  %s810_s26 = sphi %s868_s26, %s1053_s26   ;;  %s806_s25 = sphi %s866_s25, %s1052_s25   ;;  %s802_s24 = sphi %s864_s24, %s1051_s24   ;;  %s798_s23 = sphi %s862_s23, %s1050_s23   ;;  %s794_s22 = sphi %s860_s22, %s1049_s22   ;;  %s790_s21 = sphi %s858_s21, %s1048_s21   ;;  %s786_s20 = sphi %s856_s20, %s1047_s20  }
   0x8   : > { %p29_p0 = scmp.ge.s32.totalorder %s28_s28, 2  ;;  %s31_s29 = sadd.s32 1, %s810_s26 }
   0x9   : > { %s40_s30 = sadd.s32 1, %s794_s22  ;;  %p47_p1 = scmp.ne.s32.totalorder %s794_s22, %s790_s21 }
   0xa   : > { %s1055_s28 = smov (%p29_p0, %s28_s28), 0  ;;  %s1057_s29 = smov (!%p29_p0, %s31_s29), %s810_s26 }
   0xb   : > { %s36_s6 = ssub.s32 %s806_s25, %s1055_s28  ;;  %p48_p2 = scmp.eq.s32.totalorder %s814_s27, 0 }
   0xc   : > { %p33_p3 = scmp.ge.s32.totalorder %s1057_s29, 2  ;;  %p53_p4 = scmp.ne.s32.totalorder %s790_s21, %s786_s20 }
   0xd   : > { %p907_p5 = por %p48_p2, %p47_p1  ;;  %p54_p6 = scmp.eq.s32.totalorder %s580_s4, 0 }
   0xe   : > { %s1059_s29 = smov (%p33_p3, %s1057_s29), 0  ;;  %p641_p8 = scmp.lt.s32.totalorder %s814_s27, 4 }
   0xf   : > { %1043 = sst [smem:[#allocation7_spill]] %s1059_s29  ;;  %p913_p7 = por %p54_p6, %p53_p4 }
  0x10   : > { %s35_s9 = ssub.s32 %s810_s26, %s1059_s29  ;;  %s199_s11 = sand.u32 1, %s794_s22  }
  0x11   : > { %s37_s10 = sor.u32 %s36_s6, %s35_s9  ;;  %s584_s12 = sshll.u32 %s199_s11, 6 }
  0x12   : > { %p38_p9 = scmp.eq.s32.totalorder %s37_s10, 0  ;;  %s605_s13 = sshll.u32 %s810_s26, 4 }
  0x13   : > { %s209_s15 = sadd.s32 %s806_s25, %s605_s13  ;;  %s203_s17 = scalar_lea.vmem [#allocation4], %s584_s12 }
  0x14   : > { %s923_s14 = scalar_select %p38_p9, %s794_s22, %s40_s30  }
  0x15   : > { %s587_s16 = sshll.u32 %s209_s15, 7  ;;  %s212_s18 = sshll.u32 %s203_s17, 4  ;;  %s213_s18 = int_to_ptr.vmem [resolvable:$true] %s212_s18 }
  0x16   : > { %s211_s4 = scalar_lea.hbm %s1035_s0, %s587_s16  ;;  %p933_p10 = pnand %p641_p8, %p907_p5 }
  0x17   : > { %p588_p11 = scmp.ge.s32.totalorder %s814_s27, 1  ;;  %s200_s6 = scalar_lea.sflag [#allocation5], %s199_s11 }
  0x18   : > { %p722_p12 = pneg %p933_p10  ;;  %s733_s30 = scalar_lea.vmem %s213_s18, 1024 }
  0x19   : > { %p734_p13 = scmp.ne.s32.totalorder %s213_s18, %s733_s30  ;;  %s816_s9 = smov [#allocation4]  }
  0x1a   : > { %s738_s10 = sshll.u32 %s816_s9, 4  ;;  %s739_s10 = int_to_ptr.vmem [resolvable:$false] %s738_s10 }
  0x1b   : > { %p736_p0 = pnand %p734_p13, %p722_p12  ;;  %s740_s12 = scalar_lea.vmem %s739_s10, 2048 }
  0x1c   : > { %p741_p2 = scmp.lt.s32.totalorder %s213_s18, %s739_s10  ;;  %p742_p3 = scmp.lt.s32.totalorder %s740_s12, %s733_s30 }
  0x1d   : > { %p737_p1 = pneg %p736_p0 }
  0x1e   : > { %p743_p4 = por %p742_p3, %p741_p2 }
  0x20   : > { %p744_p5 = pnand %p743_p4, %p737_p1 }
  0x22   : > { %747 = shalt.err (!%p744_p5)
}
  0x23   : > { %s817_s7 = smov 256   ;;  %s818_s11 = smov 128  }
  0x24   : > { %s819_s13 = smov 8   ;;  %p220_p6 = scmp.lt.s32.totalorder %s814_s27, 5 }
  0x25   : > { %640 = dma.hbm_to_vmem [thread:$0]  (!%p933_p10), %s211_s4, 1024, %s213_s18, %s200_s6, %s817_s7, %s818_s11, %s819_s13  }
  0x26   : > { %p221_p8 = pnand %p588_p11, %p220_p6 }
  0x27   : > { %s226_s15 = sand.u32 (!%p221_p8), 1, %s790_s21  }
  0x28   : > { %224 = sbr.rel (%p221_p8) target bundleno = 439 (0x1b7), region = 40  ;;  %s589_s16 = sshll.u32 (!%p221_p8), %s226_s15, 6 }
  0x29   : > { %s227_s17 = scalar_lea.sflag (!%p221_p8), [#allocation5], %s226_s15  ;;  %s946_s19 = scalar_lea.vmem (!%p221_p8), [#allocation4], %s589_s16 }
  0x2d   : > { %781 = dma.done.wait (%p913_p7), %s227_s17, 1024  }
  0x2e   : > { %783 = vsyncadd (%p913_p7), %s227_s17, 4294966272  ;;  %p257_p9 = scmp.lt.s32.totalorder %s802_s24, 1  ;;  %p591_p10 = scmp.ne.s32.totalorder %s798_s23, 0 }
  0x30   : > { %s1061_s24 = smov (!%p257_p9, %s802_s24), 1  ;;  %265 = sbr.rel (%p591_p10) target bundleno = 55 (0x37), region = 48 }
  0x31   : > { %s590_s29 = sshll.u32 %s1061_s24, 3 }
  0x32   : > { %s957_s4 = scalar_lea.vmem %s1040_s5, %s590_s29 }
  0x35   : > { %vm266_vm0 = vcmask 261120   ;;  %v820_v0 = vmov 0.0  }
  0x36   : > { %267 = vst.msk [vmem:[#allocation2] sm:$0xff] %vm266_vm0, %v820_v0 }
  0x37 PF: > { %v712_v1 = vld [vmem:[%s1036_s1 + $0x38] sm:$0xff]   ;;  %v821_v2 = vmov 0.0   ;;  %v713_v3 = vld [vmem:[%s1036_s1 + $0x30] sm:$0xff]   ;;  %vm822_vm1 = vmmov 0   ;;  %v714_v4 = vld [vmem:[%s1036_s1 + $0x28] sm:$0xff]   ;;  %vm365_vm2 = vcmask 1041409  }
  0x38   : > { %615 = vmatprep.subr.bf16.mxu0 %v821_v2  ;;  %631 = vmatprep.mubr.msk.bf16.mxu0 %vm822_vm1, %v821_v2  ;;  %v268_v5 = vld [vmem:[%s946_s19] sm:$0xff]  ;;  %v269_v6 = vld [vmem:[%s946_s19 + $0x8] sm:$0xff]  ;;  %v270_v7 = vld [vmem:[%s946_s19 + $0x10] sm:$0xff]  ;;  %vm367_vm3 = vcmask 1042434   ;;  %vm369_vm4 = vcmask 1043459   ;;  %vm371_vm5 = vcmask 1044484  }
  0x39   : > { %616 = vmatpush3.bf16.msra.mxu0 %v712_v1  ;;  %v271_v8 = vld [vmem:[%s946_s19 + $0x18] sm:$0xff]  ;;  %v272_v9 = vld [vmem:[%s946_s19 + $0x20] sm:$0xff]  ;;  %v273_v10 = vld [vmem:[%s946_s19 + $0x28] sm:$0xff]  ;;  %v276_v11 = vrot.slane %v268_v5, 4  ;;  %v282_v12 = vrot.slane %v269_v6, 4  ;;  %v288_v13 = vrot.slane %v270_v7, 4 }
  0x3a   : > { %617 = vmatprep.subr.bf16.mxu0 %v821_v2  ;;  %v715_v14 = vld [vmem:[%s1036_s1 + $0x20] sm:$0xff]   ;;  %v274_v15 = vld [vmem:[%s946_s19 + $0x30] sm:$0xff]  ;;  %v294_v17 = vrot.slane %v271_v8, 4  ;;  %v300_v18 = vrot.slane %v272_v9, 4  ;;  %v306_v19 = vrot.slane %v273_v10, 4  ;;  %v717_v49 = vld [vmem:[%s1036_s1 + $0x10] sm:$0xff]  }
  0x3b   : > { %v275_v16 = vld [vmem:[%s946_s19 + $0x38] sm:$0xff]  ;;  %v277_v20 = vadd.f32 %v276_v11, %v268_v5  ;;  %v283_v21 = vadd.f32 %v282_v12, %v269_v6  ;;  %v289_v22 = vadd.f32 %v288_v13, %v270_v7  ;;  %v312_v23 = vrot.slane %v274_v15, 4  ;;  %v716_v32 = vld [vmem:[%s1036_s1 + $0x18] sm:$0xff]   ;;  %p600_p7 = scmp.ne.s32.totalorder %s798_s23, 1 }
  0x3c   : > { %v295_v24 = vadd.f32 %v294_v17, %v271_v8  ;;  %v301_v25 = vadd.f32 %v300_v18, %v272_v9  ;;  %v307_v26 = vadd.f32 %v306_v19, %v273_v10  ;;  %v318_v27 = vrot.slane %v275_v16, 4  ;;  %v719_v17 = vld [vmem:[%s1036_s1] sm:$0xff]   ;;  %s497_s30 = sld [smem:[#allocation3]] (!%p600_p7) }
  0x3d   : > { %618 = vmatpush3.bf16.msra.mxu0 %v713_v3  ;;  %v278_v28 = vrot.slane %v277_v20, 2  ;;  %v284_v29 = vrot.slane %v283_v21, 2  ;;  %v290_v30 = vrot.slane %v289_v22, 2  ;;  %v313_v31 = vadd.f32 %v312_v23, %v274_v15  ;;  %v718_v3 = vld [vmem:[%s1036_s1 + $0x8] sm:$0xff]  }
  0x3e   : > { %619 = vmatprep.subr.bf16.mxu0 %v821_v2  ;;  %v296_v33 = vrot.slane %v295_v24, 2  ;;  %v302_v34 = vrot.slane %v301_v25, 2  ;;  %v308_v35 = vrot.slane %v307_v26, 2  ;;  %v319_v36 = vadd.f32 %v318_v27, %v275_v16  ;;  %v324_v27 = vld [vmem:[#allocation2] sm:$0xff] }
  0x3f   : > { %v279_v37 = vadd.f32 %v278_v28, %v277_v20  ;;  %v285_v38 = vadd.f32 %v284_v29, %v283_v21  ;;  %v291_v39 = vadd.f32 %v290_v30, %v289_v22  ;;  %v314_v40 = vrot.slane %v313_v31, 2 }
  0x40   : > { %v297_v41 = vadd.f32 %v296_v33, %v295_v24  ;;  %v303_v42 = vadd.f32 %v302_v34, %v301_v25  ;;  %v309_v43 = vadd.f32 %v308_v35, %v307_v26  ;;  %v320_v44 = vrot.slane %v319_v36, 2 }
  0x41   : > { %620 = vmatpush3.bf16.msra.mxu0 %v714_v4  ;;  %v280_v45 = vrot.slane %v279_v37, 1  ;;  %v286_v46 = vrot.slane %v285_v38, 1  ;;  %v292_v47 = vrot.slane %v291_v39, 1  ;;  %v315_v48 = vadd.f32 %v314_v40, %v313_v31 }
  0x42   : > { %621 = vmatprep.subr.bf16.mxu0 %v821_v2  ;;  %v298_v50 = vrot.slane %v297_v41, 1  ;;  %v304_v51 = vrot.slane %v303_v42, 1  ;;  %v310_v52 = vrot.slane %v309_v43, 1  ;;  %v321_v53 = vadd.f32 %v320_v44, %v319_v36 }
  0x43   : > { %v281_v54 = vadd.f32 %v280_v45, %v279_v37  ;;  %v287_v55 = vadd.f32 %v286_v46, %v285_v38  ;;  %v293_v56 = vadd.f32 %v292_v47, %v291_v39  ;;  %v316_v57 = vrot.slane %v315_v48, 1 }
  0x44   : > { %v299_v58 = vadd.f32 %v298_v50, %v297_v41  ;;  %v305_v59 = vadd.f32 %v304_v51, %v303_v42  ;;  %v311_v60 = vadd.f32 %v310_v52, %v309_v43  ;;  %v322_v61 = vrot.slane %v321_v53, 1 }
  0x45   : > { %622 = vmatpush3.bf16.msra.mxu0 %v715_v14  ;;  %v317_v62 = vadd.f32 %v316_v57, %v315_v48  ;;  %v325_v63 = vpack.c.bf16 %v281_v54, %v281_v54  ;;  %v326_v0 = vpack.c.bf16 %v287_v55, %v287_v55  ;;  %v327_v1 = vpack.c.bf16 %v293_v56, %v293_v56 }
  0x46   : > { %623 = vmatprep.subr.bf16.mxu0 %v821_v2  ;;  %v323_v4 = vadd.f32 %v322_v61, %v321_v53  ;;  %v328_v5 = vpack.c.bf16 %v299_v58, %v299_v58  ;;  %v329_v6 = vpack.c.bf16 %v305_v59, %v305_v59  ;;  %v330_v7 = vpack.c.bf16 %v311_v60, %v311_v60 }
  0x47   : > { %v331_v8 = vpack.c.bf16 %v317_v62, %v317_v62  ;;  %v357_v9 = vunpack.c.l.b16 %v325_v63  ;;  %v358_v10 = vunpack.c.l.b16 %v326_v0  ;;  %v359_v11 = vunpack.c.l.b16 %v327_v1 }
  0x48   : > { %v332_v12 = vpack.c.bf16 %v323_v4, %v323_v4  ;;  %v360_v13 = vunpack.c.l.b16 %v328_v5  ;;  %v361_v14 = vunpack.c.l.b16 %v329_v6  ;;  %v362_v15 = vunpack.c.l.b16 %v330_v7 }
  0x49   : > { %624 = vmatpush3.bf16.msra.mxu0 %v716_v32  ;;  %v366_v16 = vsel %vm365_vm2, %v358_v10, %v357_v9  ;;  %v363_v18 = vunpack.c.l.b16 %v331_v8  ;;  %vm373_vm6 = vcmask 1045509   ;;  %vm375_vm7 = vcmask 1046534  }
  0x4a   : > { %625 = vmatprep.subr.bf16.mxu0 %v821_v2  ;;  %v368_v19 = vsel %vm367_vm3, %v359_v11, %v366_v16  ;;  %v364_v20 = vunpack.c.l.b16 %v332_v12  ;;  %vm377_vm8 = vcmask 1047559   ;;  %vm470_vm9 = vcmask 261120  }
  0x4b   : > { %v370_v21 = vsel %vm369_vm4, %v360_v13, %v368_v19 }
  0x4c   : > { %v372_v22 = vsel %vm371_vm5, %v361_v14, %v370_v21 }
  0x4d   : > { %626 = vmatpush3.bf16.msra.mxu0 %v717_v49  ;;  %v374_v23 = vsel %vm373_vm6, %v362_v15, %v372_v22 }
  0x4e   : > { %627 = vmatprep.subr.bf16.mxu0 %v821_v2  ;;  %v376_v24 = vsel %vm375_vm7, %v363_v18, %v374_v23 }
  0x4f   : > { %v378_v25 = vsel %vm377_vm8, %v364_v20, %v376_v24 }
  0x50   : > { %v379_v26 = vpack.c.b16 %v378_v25, %v378_v25 }
  0x51   : > { %628 = vmatpush3.bf16.msra.mxu0 %v718_v3 }
  0x52   : > { %629 = vmatprep.subr.bf16.mxu0 %v821_v2 }
  0x55   : > { %630 = vmatpush3.bf16.msra.mxu0 %v719_v17 }
  0x58   : > { %632 = vmatmul.mubr.bf16.vlgmr.msra.gmra.mxu0 %v379_v26 }
 0x118   : > { %v463_v28 = vpop.f32.mrf.mxu0 }
 0x119   : > { %v469_v29 = vadd.f32 %v463_v28, %v324_v27 }
 0x11a   : > { %v633_v30 = vpop.f32.mrf.mxu0  ;;  %475 = sbr.rel (%p600_p7) target bundleno = 439 (0x1b7), region = 52 }
 0x11b   : > { %471 = vst.msk [vmem:[#allocation2] sm:$0xff] %vm470_vm9, %v469_v29 }
 0x11c   : > { %v466_v31 = vpop.f32.mrf.mxu0 }
 0x11e   : > { %v634_v32 = vpop.f32.mrf.mxu0 }
 0x11f   : > { %v601_v33 = vld [vmem:[%s1037_s2] ss:$0 sm:$0xff]  ;;  %v498_v39 = vstv %s497_s30  ;;  %vm500_vm10 = vcmask 7168  }
 0x120   : > { %v602_v35 = vld [vmem:[%s1038_s3] ss:$0 sm:$0xff] }
 0x122   : > { %v476_v2 = vld [vmem:[#allocation2] sm:$0xff] }
 0x123   : > { %v477_v34 = vmul.f32 0.0078125, %v476_v2 }
 0x125   : > { %v485_v36 = vadd.f32 %v601_v33, %v477_v34 }
 0x127   : > { %v493_v37 = vmul.f32 %v602_v35, %v485_v36 }
 0x129   : > { %v494_v38 = vsel %vm470_vm9, %v493_v37, 0.0 }
 0x12a   : > { %495 = vadd.xlane.f32.xlu0 %v494_v38 }
 0x1b3   : > { %v496_v40 = vpop.xlane.xlu0 %495 }
 0x1b4   : > { %v499_v41 = vadd.f32 %v498_v39, %v496_v40 }
 0x1b6   : > { %501 = vst.msk [vmem:[%s957_s4] sm:$0xff] %vm500_vm10, %v499_v41 }
 0x1b7 PF: > { %s19_s27 = sadd.s32 1, %s814_s27   ;;  %s1046_s9 = sld [smem:[#allocation7_spill]] }
 0x1b8   : > { %p16_p11 = scmp.ge.s32.totalorder %s19_s27, 6   ;;  %s1047_s20 = smov %s790_s21 }
 0x1b9   : > { %s1048_s21 = smov %s794_s22  ;;  %s1049_s22 = smov %s923_s14 }
 0x1ba   : > { %s1050_s23 = smov %s806_s25  ;;  %s1051_s24 = smov %s810_s26 }
 0x1bb   : > { %s1052_s25 = smov %s1055_s28  ;;  %18 = sbr.rel (!%p16_p11) target bundleno = 7 (0x7), region = 88 }
 0x1bd   : > { %s1053_s26 = smov %s1046_s9 }
 0x1c0   :  { %521 = vsyncpa [#allocation5], 1 }
 0x1c1   :  { %523 = vsyncpa [#allocation5 + $0x1], 1 }

</bundles_post_ra>
